<compile_context>
chip_gen: v7x
topology: tpu7x:2x2x1
jax: 0.10.0
libtpu: 0.0.40
codegen_flags: <defaults>
</compile_context>

<pallas_src>
import functools
import math

import jax
import jax.numpy as jnp
from jax.experimental import pallas as pl
from jax.experimental.pallas import tpu as pltpu


def _round_up(x, m):
    return (x + m - 1) // m * m


def _vmem_tile_bytes(rows, cols, itemsize):
    # Conservative VMEM footprint of one tile: sublane-pad to 8, lane-pad to 128.
    return _round_up(rows, 8) * _round_up(cols, 128) * itemsize


def _multilinear_kernel(x1_ref, x2_ref, w1_ref, w2_ref, b_ref, o_ref, *, activation):
    # Two MXU pushes into a single fp32 accumulator, one fp32 bias add +
    # activation epilogue, one store of the full-H (unpadded) output block.
    y = jnp.dot(x1_ref[...], w1_ref[...], preferred_element_type=jnp.float32)
    y = y + jnp.dot(x2_ref[...], w2_ref[...], preferred_element_type=jnp.float32)
    o_ref[...] = activation(y + b_ref[...]).astype(o_ref.dtype)


def init_params(key, input_size_1, input_size_2, output_size):
    """Deterministic init mimicking nn.Linear's U(-1/sqrt(fan_in), 1/sqrt(fan_in))."""
    k1, k2, k3, k4 = jax.random.split(key, 4)
    s1 = 1.0 / jnp.sqrt(jnp.float32(input_size_1))
    s2 = 1.0 / jnp.sqrt(jnp.float32(input_size_2))
    # Store weights already transposed: [D_in, H].
    w1_t = jax.random.uniform(k1, (input_size_1, output_size), jnp.float32, -s1, s1)
    b1 = jax.random.uniform(k2, (1, output_size), jnp.float32, -s1, s1)
    w2_t = jax.random.uniform(k3, (input_size_2, output_size), jnp.float32, -s2, s2)
    b2 = jax.random.uniform(k4, (1, output_size), jnp.float32, -s2, s2)
    return w1_t, b1, w2_t, b2


def prepare_params(w1_t, b1, w2_t, b2, *, param_dtype=jnp.float32):
    """One-time param prep: pre-sum the biases (fp32 epilogue), optionally cast
    the streamed weights to bf16 for v6e/v7x."""
    b = (b1 + b2).astype(jnp.float32)  # [1, H] — epilogue stays fp32 on all gens
    return w1_t.astype(param_dtype), w2_t.astype(param_dtype), b


@functools.partial(jax.jit, static_argnames=("block_b", "activation", "out_dtype"))
def multilinear_forward(x1, x2, w1_t, w2_t, b, *, block_b=1024,
                        activation=jax.nn.sigmoid, out_dtype=jnp.float32):
    """x1:[B,D1], x2:[B,D2], w1_t:[D1,H], w2_t:[D2,H], b:[1,H] -> [B,H]."""
    B, D1 = x1.shape
    _, D2 = x2.shape
    H = int(w1_t.shape[1])

    # Match activation dtype to the streamed-weight dtype (bf16 path on v6e/v7x).
    x1 = x1.astype(w1_t.dtype)
    x2 = x2.astype(w2_t.dtype)

    # --- Balanced batch tiling --------------------------------------------
    # tb = round_up(ceil(B / n_tiles), 8) bounds Bp padding (e.g. B=520,
    # block_b=512 -> tb=264, Bp=528 instead of 1024).
    n_tiles = max(1, math.ceil(B / block_b))
    tb = _round_up(math.ceil(B / n_tiles), 8)
    Bp = _round_up(B, tb)
    # If we ended up with a single grid step but B allows two tiles, split so
    # both v7x TensorCores get work under the "parallel" B axis.
    if Bp // tb < 2 and Bp >= 16:
        tb = _round_up(math.ceil(B / 2), 8)
        Bp = _round_up(B, tb)
    grid_b = Bp // tb

    if Bp != B:
        x1 = jnp.pad(x1, ((0, Bp - B), (0, 0)))
        x2 = jnp.pad(x2, ((0, Bp - B), (0, 0)))

    # --- VMEM budget (lane/sublane-padded), 2x headroom, capped for v7x ----
    itm_x = jnp.dtype(x1.dtype).itemsize
    itm_w = jnp.dtype(w1_t.dtype).itemsize
    itm_o = jnp.dtype(out_dtype).itemsize
    need = (2 * (_vmem_tile_bytes(tb, D1, itm_x) + _vmem_tile_bytes(tb, D2, itm_x))
            + 2 * _vmem_tile_bytes(tb, H, itm_o)
            + _vmem_tile_bytes(D1, H, itm_w) + _vmem_tile_bytes(D2, H, itm_w)
            + _vmem_tile_bytes(1, H, 4))
    vmem_limit = int(min(64 << 20, max(16 << 20, 2 * need)))

    out = pl.pallas_call(
        functools.partial(_multilinear_kernel, activation=activation),
        out_shape=jax.ShapeDtypeStruct((Bp, H), out_dtype),
        grid=(grid_b,),
        in_specs=[
            pl.BlockSpec((tb, D1), lambda i: (i, 0)),   # x1 streams over B
            pl.BlockSpec((tb, D2), lambda i: (i, 0)),   # x2 streams over B
            pl.BlockSpec((D1, H), lambda i: (0, 0)),    # W1^T, VMEM-resident
            pl.BlockSpec((D2, H), lambda i: (0, 0)),    # W2^T, VMEM-resident
            pl.BlockSpec((1, H), lambda i: (0, 0)),     # fused bias, VMEM-resident
        ],
        out_specs=pl.BlockSpec((tb, H), lambda i: (i, 0)),
        compiler_params=pltpu.CompilerParams(
            # B tiles are independent -> shard across v7x's two TensorCores.
            dimension_semantics=("parallel",),
            vmem_limit_bytes=vmem_limit,
        ),
    )(x1, x2, w1_t, w2_t, b)

    # Strip batch padding only if we actually added it (no extra pass otherwise).
    return out if Bp == B else out[:B]


if __name__ == "__main__":
    B = 8            # batch
    D1 = 16          # input_size_1 (e.g. dynamic features)
    D2 = 4           # input_size_2 (e.g. static catchment attributes)
    H = 32           # output_size (hidden size)

    key = jax.random.PRNGKey(0)
    kx1, kx2, kp = jax.random.split(key, 3)
    x1 = jax.random.normal(kx1, (B, D1), jnp.float32)
    x2 = jax.random.normal(kx2, (B, D2), jnp.float32)

    w1_t, b1, w2_t, b2 = init_params(kp, D1, D2, H)
    # Demo keeps fp32; on v6e/v7x use param_dtype=jnp.bfloat16 and
    # out_dtype=jnp.bfloat16 to halve HBM traffic (relax the tolerance).
    w1p, w2p, bsum = prepare_params(w1_t, b1, w2_t, b2, param_dtype=jnp.float32)

    out = multilinear_forward(x1, x2, w1p, w2p, bsum, block_b=1024,
                              activation=jax.nn.sigmoid, out_dtype=jnp.float32)
    out = jax.block_until_ready(out)

    # Pure-JAX reference check (original two-Linear formulation).
    ref = jax.nn.sigmoid(x1 @ w1_t + b1 + x2 @ w2_t + b2)
    assert out.shape == (B, H)
    assert jnp.allclose(out, ref, atol=1e-5, rtol=1e-5), "mismatch vs reference"

    print("KERNEL_OK")
</pallas_src>

<mosaic_0001>
module attributes {stable_mosaic.version = 11 : i64} {
  func.func @_multilinear_kernel(%arg0: i32, %arg1: memref<8x16xf32, #tpu.memory_space<vmem>>, %arg2: memref<8x4xf32, #tpu.memory_space<vmem>>, %arg3: memref<16x32xf32, #tpu.memory_space<vmem>>, %arg4: memref<4x32xf32, #tpu.memory_space<vmem>>, %arg5: memref<1x32xf32, #tpu.memory_space<vmem>>, %arg6: memref<8x32xf32, #tpu.memory_space<vmem>>) attributes {dimension_semantics = [#tpu.dimension_semantics<parallel>], iteration_bounds = array<i64: 1>, scalar_prefetch = 0 : i64, scratch_operands = 0 : i64, tpu.core_type = #tpu.core_type<tc>, window_params = [{transform_indices = @transform_0, window_bounds = array<i64: 8, 16>}, {transform_indices = @transform_1, window_bounds = array<i64: 8, 4>}, {pipeline_mode = #tpu.pipeline_mode<synchronous>, transform_indices = @transform_2, window_bounds = array<i64: 16, 32>}, {pipeline_mode = #tpu.pipeline_mode<synchronous>, transform_indices = @transform_3, window_bounds = array<i64: 4, 32>}, {pipeline_mode = #tpu.pipeline_mode<synchronous>, transform_indices = @transform_4, window_bounds = array<i64: 1, 32>}, {transform_indices = @transform_5, window_bounds = array<i64: 8, 32>}]} {
    %c0 = arith.constant 0 : index
    %c0_0 = arith.constant 0 : index
    %0 = vector.load %arg1[%c0, %c0_0] : memref<8x16xf32, #tpu.memory_space<vmem>>, vector<8x16xf32>
    %c0_1 = arith.constant 0 : index
    %c0_2 = arith.constant 0 : index
    %1 = vector.load %arg3[%c0_1, %c0_2] : memref<16x32xf32, #tpu.memory_space<vmem>>, vector<16x32xf32>
    %cst = arith.constant dense<0.000000e+00> : vector<8x32xf32>
    %2 = tpu.matmul %0, %1, %cst {dimension_numbers = #tpu.dot_dimension_numbers<[1], [0], [0], [1], [0, 0, 1, 1], [], []>} : vector<8x16xf32>, vector<16x32xf32>, vector<8x32xf32> -> vector<8x32xf32>
    %c0_3 = arith.constant 0 : index
    %c0_4 = arith.constant 0 : index
    %3 = vector.load %arg2[%c0_3, %c0_4] : memref<8x4xf32, #tpu.memory_space<vmem>>, vector<8x4xf32>
    %c0_5 = arith.constant 0 : index
    %c0_6 = arith.constant 0 : index
    %4 = vector.load %arg4[%c0_5, %c0_6] : memref<4x32xf32, #tpu.memory_space<vmem>>, vector<4x32xf32>
    %cst_7 = arith.constant dense<0.000000e+00> : vector<8x32xf32>
    %5 = tpu.matmul %3, %4, %cst_7 {dimension_numbers = #tpu.dot_dimension_numbers<[1], [0], [0], [1], [0, 0, 1, 1], [], []>} : vector<8x4xf32>, vector<4x32xf32>, vector<8x32xf32> -> vector<8x32xf32>
    %6 = arith.addf %2, %5 : vector<8x32xf32>
    %c0_8 = arith.constant 0 : index
    %c0_9 = arith.constant 0 : index
    %7 = vector.load %arg5[%c0_8, %c0_9] : memref<1x32xf32, #tpu.memory_space<vmem>>, vector<1x32xf32>
    %8 = vector.broadcast %7 : vector<1x32xf32> to vector<8x32xf32>
    %9 = arith.addf %6, %8 : vector<8x32xf32>
    %10 = arith.negf %9 : vector<8x32xf32>
    %11 = math.exp %10 : vector<8x32xf32>
    %cst_10 = arith.constant 1.000000e+00 : f32
    %12 = vector.broadcast %cst_10 : f32 to vector<8x32xf32>
    %13 = arith.addf %12, %11 : vector<8x32xf32>
    %14 = arith.divf %12, %13 : vector<8x32xf32>
    %c0_11 = arith.constant 0 : index
    %c0_12 = arith.constant 0 : index
    %15 = vector.load %arg6[%c0_11, %c0_12] : memref<8x32xf32, #tpu.memory_space<vmem>>, vector<8x32xf32>
    tpu.vector_store %arg6[%c0_11, %c0_12], %14 {strides = array<i32>} : memref<8x32xf32, #tpu.memory_space<vmem>>, vector<8x32xf32>,
    return
  }
  func.func @transform_0(%arg0: i32) -> (i32, i32) {
    %c0_i32 = arith.constant 0 : i32
    %c0_i32_0 = arith.constant 0 : i32
    return %arg0, %c0_i32 : i32, i32
  }
  func.func @transform_1(%arg0: i32) -> (i32, i32) {
    %c0_i32 = arith.constant 0 : i32
    %c0_i32_0 = arith.constant 0 : i32
    return %arg0, %c0_i32 : i32, i32
  }
  func.func @transform_2(%arg0: i32) -> (i32, i32) {
    %c0_i32 = arith.constant 0 : i32
    %c0_i32_0 = arith.constant 0 : i32
    %c0_i32_1 = arith.constant 0 : i32
    return %c0_i32, %c0_i32_0 : i32, i32
  }
  func.func @transform_3(%arg0: i32) -> (i32, i32) {
    %c0_i32 = arith.constant 0 : i32
    %c0_i32_0 = arith.constant 0 : i32
    %c0_i32_1 = arith.constant 0 : i32
    return %c0_i32, %c0_i32_0 : i32, i32
  }
  func.func @transform_4(%arg0: i32) -> (i32, i32) {
    %c0_i32 = arith.constant 0 : i32
    %c0_i32_0 = arith.constant 0 : i32
    %c0_i32_1 = arith.constant 0 : i32
    return %c0_i32, %c0_i32_0 : i32, i32
  }
  func.func @transform_5(%arg0: i32) -> (i32, i32) {
    %c0_i32 = arith.constant 0 : i32
    %c0_i32_0 = arith.constant 0 : i32
    return %arg0, %c0_i32 : i32, i32
  }
}

</mosaic_0001>

<bundles_post_ra>
// kernel: multilinear_forward.1
= control target key start
LH: loop header
LB: loop body
LE: loop exit
PB: predicated region body
PF: predicated region fallthrough
CT: control target
= control target key end

     0   :  { %10 = vsyncpa [#allocation3], 0  ;;  %s377_s0 = inlined_call_operand.hbm [shape: f32[8,16], index: 0, kind: input, shape index: {}]   ;;  %s378_s1 = inlined_call_operand.vmem [shape: f32[8,4], index: 1, kind: input, shape index: {}]   ;;  %s379_s2 = inlined_call_operand.vmem [shape: f32[16,32], index: 2, kind: input, shape index: {}]   ;;  %s380_s3 = inlined_call_operand.vmem [shape: f32[4,32], index: 3, kind: input, shape index: {}]   ;;  %s381_s4 = inlined_call_operand.vmem [shape: f32[1,32], index: 4, kind: input, shape index: {}]   ;;  %s382_s5 = inlined_call_operand.hbm [shape: f32[8,32], index: 5, kind: output, shape index: {}]  }
   0x1   :  { %11 = vsyncpa [#allocation4], 0  ;;  %s303_s18 = smov [#allocation2]   ;;  %s255_s22 = scalar_lea.hbm %s377_s0, 128 }
   0x2   :  { %s18_s19 = sshll.u32 %s303_s18, 4  ;;  %p256_p0 = scmp.ne.s32.totalorder %s377_s0, %s255_s22  ;;  %s19_s19 = int_to_ptr.vmem [resolvable:$true] %s18_s19 }
   0x3   :  { %p259_p1 = scmp.lt.u32.totalorder %s255_s22, %s377_s0 }
   0x5   :  { %p261_p2 = pnand %p259_p1, %p256_p0 }
   0x7   :  { %264 = shalt.err (!%p261_p2)
}
   0x8   :  { %s265_s27 = scalar_lea.vmem %s19_s19, 128  ;;  %p270_p4 = scmp.lt.s32.totalorder %s19_s19, %s19_s19 }
   0x9   :  { %p266_p3 = scmp.ne.s32.totalorder %s19_s19, %s265_s27  ;;  %p271_p5 = scmp.lt.s32.totalorder %s265_s27, %s265_s27 }
   0xb   :  { %p272_p6 = por %p271_p5, %p270_p4 }
   0xd   :  { %p273_p7 = pnand %p272_p6, %p266_p3 }
   0xf   :  { %276 = shalt.err (!%p273_p7)
}
  0x10   :  { %21 = dma.hbm_to_vmem [thread:$0]  %s377_s0, 128, %s19_s19, [#allocation3]  }
  0x11   :  { %299 = dma.done.wait [#allocation3], 128  }
  0x12   :  { %300 = vsyncadd [#allocation3], 4294967168  ;;  %v304_v0 = vmov 0.0|0.0   ;;  %v305_v1 = vmov 0.0   ;;  %vm306_vm0 = vmmov 0   ;;  %vm42_vm1 = vcmask 1043456  }
  0x13   :  { %243 = vmatprep.subr.bf16.mxu1 %v304_v0  ;;  %231 = vmatprep.subr.mxu0 %v305_v1  ;;  %vm38_vm2 = vcmask 31744   ;;  %v34_v2 = vld [vmem:[%s379_s2] sm:$0xff]  ;;  %v35_v3 = vld [vmem:[%s379_s2 + $0x8] sm:$0xff]  ;;  %vm116_vm3 = vcmask 130048   ;;  %vm204_vm4 = vcmask 261120  }
  0x14   :  { %233 = vmatprep.mubr.msk.f32.mxu0 %vm306_vm0, %v305_v1  ;;  %240 = vmatprep.mubr.msk.f32.mxu1 %vm306_vm0, %v305_v1  ;;  %v37_v4 = vld [vmem:[%s380_s3] sm:$0xf]  ;;  %v244_v5 = vpack.c.bf16 %v35_v3, %v34_v2 }
  0x15   :  { %232 = vmatpush3.msk.msra.mxu0 %vm42_vm1, %v37_v4  ;;  %v36_v6 = vld [vmem:[%s378_s1] sm:$0xff]  ;;  %s307_s1 = smov [#allocation5]  }
  0x16   :  { %234 = vmatmul.mubr.msk.f32.vlgmr.msra.gmra.mrb[0].mxu0 %vm38_vm2, %v36_v6  ;;  %245 = vmatpush3.bf16.msra.mxu1 %v244_v5  ;;  %v33_v7 = vld [vmem:[#allocation2] sm:$0xff]  ;;  %s212_s3 = sshll.u32 %s307_s1, 4  ;;  %s213_s3 = int_to_ptr.vmem [resolvable:$true] %s212_s3 }
  0x17   :  { %v224_v11 = vld [vmem:[%s381_s4] ss:$0 sm:$0xff]  ;;  %s277_s13 = scalar_lea.vmem %s213_s3, 128  ;;  %p282_p9 = scmp.lt.s32.totalorder %s213_s3, %s213_s3 }
  0x18   :  { %p278_p8 = scmp.ne.s32.totalorder %s213_s3, %s277_s13  ;;  %p283_p10 = scmp.lt.s32.totalorder %s277_s13, %s277_s13 }
  0x19   :  { %241 = vmatmul.mubr.msk.f32.vlgmr.msra.gmra.mrb[0].mxu1 %vm116_vm3, %v33_v7 }
  0x1a   :  { %p284_p11 = por %p283_p10, %p282_p9 }
  0x1c   :  { %p285_p12 = pnand %p284_p11, %p278_p8 }
  0xe9   :  { %v112_v8 = vpop.f32.mrb[0].mxu0 }
  0xea   :  { %v235_v9 = vpop.f32.mrb[1].mxu0 }
  0xec   :  { %v186_v10 = vpop.f32.mrb[0].mxu1 }
  0xed   :  { %v187_v12 = vadd.f32 %v186_v10, %v112_v8  ;;  %v242_v13 = vpop.f32.mrb[1].mxu1 }
  0xef   :  { %v197_v14 = vadd.f32 %v224_v11, %v187_v12 }
  0xf1   :  { %v225_v15 = vmul.f32 -1.442695, %v197_v14 }
  0xf3   :  { %251 = vpow2.f32 %v225_v15 }
  0xfd   :  { %v252_v16 = vpop.eup %251 }
  0xfe   :  { %v201_v17 = vadd.f32 1.0, %v252_v16 }
 0x100   :  { %253 = vrcp.f32 %v201_v17 }
 0x10a   :  { %v254_v18 = vpop.eup %253 }
 0x10b   :  { %205 = vst.msk [vmem:[#allocation5] sm:$0xff] %vm204_vm4, %v254_v18 }
 0x10c   :  { %288 = shalt.err (!%p285_p12)
}
 0x10d   :  { %s289_s15 = scalar_lea.hbm %s382_s5, 128 }
 0x10e   :  { %p290_p13 = scmp.ne.s32.totalorder %s382_s5, %s289_s15  ;;  %p293_p0 = scmp.lt.u32.totalorder %s289_s15, %s382_s5 }
 0x110   :  { %p295_p1 = pnand %p293_p0, %p290_p13 }
 0x112   :  { %298 = shalt.err (!%p295_p1)
}
 0x113   :  { %215 = dma.vmem_to_hbm [thread:$0]  %s213_s3, 128, %s382_s5, [#allocation4]  }
 0x114   :  { %301 = dma.done.wait [#allocation4], 128  }
 0x115   :  { %302 = vsyncadd [#allocation4], 4294967168 }
 0x116   :  { %219 = vsyncpa [#allocation3], 1 }
 0x117   :  { %220 = vsyncpa [#allocation4], 1 }

</bundles_post_ra>
